<compile_context>
chip_gen: v6e
topology: v6e:2x2x1
jax: 0.10.0
libtpu: 0.0.40
codegen_flags: <defaults>
</compile_context>

<pallas_src>
import jax
import jax.numpy as jnp
from jax.experimental import pallas as pl
from jax.experimental.pallas import tpu as pltpu


def _autoencoder_kernel(x_ref,
                        w1_ref, b1_ref,
                        w2_ref, b2_ref,
                        w3_ref, b3_ref,
                        w4_ref, b4_ref,
                        out_ref):
    """Fused 4-layer MLP: relu(...relu(x@W1+b1)...@W4+b4) with f32 accumulation."""
    h = x_ref[...]
    for w_ref, b_ref in ((w1_ref, b1_ref), (w2_ref, b2_ref),
                         (w3_ref, b3_ref), (w4_ref, b4_ref)):
        h = jnp.dot(h.astype(w_ref.dtype), w_ref[...],
                    preferred_element_type=jnp.float32)
        h = jnp.maximum(h + b_ref[...], 0.0)          # bias add + ReLU in f32 (VPU, free under MXU/DMA)
    out_ref[...] = h.astype(out_ref.dtype)


def _choose_tile_rows(bp):
    """Pick the (packed-)batch tile size.

    One big tile (grid of 1) amortises per-grid-step overhead for small /
    medium batches; for large batches split into >=2 tiles of <=1024 rows so
    that a "parallel" grid axis can shard across v7x's two TensorCores.
    """
    if bp <= 1024:
        return bp
    for t in range(1024, 7, -8):           # multiples of 8 (sublane constraint)
        if bp % t == 0:
            return t
    return bp                              # fallback: single full tile


def autoencoder_forward(x, params, *, use_bf16=False, tile_rows=None):
    """x: (B, D0) float32. params: dict of (in,out) weights / (1,out) biases."""
    B, D0 = x.shape
    d1 = params["w1"].shape[1]
    d2 = params["w2"].shape[1]

    # ---- lane-dense packing factor: p samples per 128-lane row --------------
    p = 128 // D0 if (D0 < 128 and 128 % D0 == 0) else 1
    while p > 1 and B % p != 0:
        p //= 2
    Bp, Dp = B // p, p * D0

    def pack_w(w):
        if p == 1:
            return w
        din, dout = w.shape
        wp = jnp.zeros((p * din, p * dout), w.dtype)
        for i in range(p):
            wp = wp.at[i * din:(i + 1) * din, i * dout:(i + 1) * dout].set(w)
        return wp

    def pack_b(b):
        return b if p == 1 else jnp.tile(b, (1, p))

    compute_dtype = jnp.bfloat16 if use_bf16 else jnp.float32
    xp = x.reshape(Bp, Dp).astype(compute_dtype)               # free, contiguous
    ws = [pack_w(params[f"w{i}"]).astype(compute_dtype) for i in range(1, 5)]
    bs = [pack_b(params[f"b{i}"]) for i in range(1, 5)]        # biases stay f32

    # ---- grid / specs --------------------------------------------------------
    if tile_rows is None:
        tile_rows = _choose_tile_rows(Bp)
    assert Bp % tile_rows == 0, "packed batch must be divisible by tile_rows"
    grid = (Bp // tile_rows,)

    in_specs = [pl.BlockSpec((tile_rows, Dp), lambda i: (i, 0))]   # x tile over batch
    for w, b in zip(ws, bs):
        # Full weight/bias blocks, constant index map -> fetched once, resident in VMEM.
        in_specs.append(pl.BlockSpec(w.shape, lambda i: (0, 0)))
        in_specs.append(pl.BlockSpec(b.shape, lambda i: (0, 0)))
    out_spec = pl.BlockSpec((tile_rows, Dp), lambda i: (i, 0))     # lane-dense (Dp = 128) store

    # Advisory cost estimate (logical flops / bytes).
    flops = 2 * B * (D0 * d1 + d1 * d2 + d2 * d1 + d1 * D0)
    bytes_accessed = (xp.size * xp.dtype.itemsize
                      + B * D0 * 4
                      + sum(a.size * a.dtype.itemsize for a in ws)
                      + sum(a.size * a.dtype.itemsize for a in bs))
    cost = pl.CostEstimate(flops=int(flops), transcendentals=0,
                           bytes_accessed=int(bytes_accessed))

    out_p = pl.pallas_call(
        _autoencoder_kernel,
        out_shape=jax.ShapeDtypeStruct((Bp, Dp), jnp.float32),
        grid_spec=pl.GridSpec(grid=grid, in_specs=in_specs, out_specs=out_spec),
        compiler_params=pltpu.CompilerParams(
            dimension_semantics=("parallel",),   # shards batch tiles across v7x's 2 TCs when grid > 1
        ),
        cost_estimate=cost,
    )(xp, ws[0], bs[0], ws[1], bs[1], ws[2], bs[2], ws[3], bs[3])

    return out_p.reshape(B, D0)                                    # free, contiguous


def init_params(key, dims):
    """PyTorch-Linear-like init (uniform +/- 1/sqrt(fan_in)); weights stored (in, out)."""
    d0, d1, d2 = dims
    layer_dims = [(d0, d1), (d1, d2), (d2, d1), (d1, d0)]
    params = {}
    keys = jax.random.split(key, 2 * len(layer_dims))
    for idx, (fan_in, fan_out) in enumerate(layer_dims):
        bound = 1.0 / (fan_in ** 0.5)
        params[f"w{idx + 1}"] = jax.random.uniform(
            keys[2 * idx], (fan_in, fan_out), minval=-bound, maxval=bound,
            dtype=jnp.float32)
        params[f"b{idx + 1}"] = jax.random.uniform(
            keys[2 * idx + 1], (1, fan_out), minval=-bound, maxval=bound,
            dtype=jnp.float32)
    return params


def reference_forward(x, params):
    """Pure-JAX reference of the PyTorch forward pass."""
    h = jnp.maximum(x @ params["w1"] + params["b1"], 0.0)
    h = jnp.maximum(h @ params["w2"] + params["b2"], 0.0)
    h = jnp.maximum(h @ params["w3"] + params["b3"], 0.0)
    h = jnp.maximum(h @ params["w4"] + params["b4"], 0.0)
    return h


if __name__ == "__main__":
    # Autoencoder(dims=[64, 32, 16]); batch of 16 samples.
    dims = (64, 32, 16)
    batch = 16

    key = jax.random.PRNGKey(0)
    k_x, k_p = jax.random.split(key)
    x = jax.random.normal(k_x, (batch, dims[0]), dtype=jnp.float32)
    params = init_params(k_p, dims)
    ref = reference_forward(x, params)

    # f32 path (default; recommended on v5e).
    out = jax.block_until_ready(autoencoder_forward(x, params))
    assert out.shape == (batch, dims[0])
    assert jnp.allclose(out, ref, atol=1e-5, rtol=1e-5), "f32 mismatch vs reference"

    # bf16 weights/activations path (recommended on v6e / v7x); f32 accumulation,
    # looser tolerance due to bf16 quantisation.
    out_bf16 = jax.block_until_ready(autoencoder_forward(x, params, use_bf16=True))
    assert out_bf16.shape == (batch, dims[0])
    assert jnp.allclose(out_bf16, ref, atol=2e-2, rtol=2e-2), "bf16 mismatch vs reference"

    print("KERNEL_OK")
</pallas_src>

<mosaic_0001>
module attributes {stable_mosaic.version = 11 : i64} {
  func.func @_autoencoder_kernel(%arg0: i32, %arg1: memref<8x128xf32, #tpu.memory_space<vmem>>, %arg2: memref<128x64xf32, #tpu.memory_space<vmem>>, %arg3: memref<1x64xf32, #tpu.memory_space<vmem>>, %arg4: memref<64x32xf32, #tpu.memory_space<vmem>>, %arg5: memref<1x32xf32, #tpu.memory_space<vmem>>, %arg6: memref<32x64xf32, #tpu.memory_space<vmem>>, %arg7: memref<1x64xf32, #tpu.memory_space<vmem>>, %arg8: memref<64x128xf32, #tpu.memory_space<vmem>>, %arg9: memref<1x128xf32, #tpu.memory_space<vmem>>, %arg10: memref<8x128xf32, #tpu.memory_space<vmem>>) attributes {dimension_semantics = [#tpu.dimension_semantics<parallel>], iteration_bounds = array<i64: 1>, scalar_prefetch = 0 : i64, scratch_operands = 0 : i64, tpu.core_type = #tpu.core_type<tc>, window_params = [{transform_indices = @transform_0, window_bounds = array<i64: 8, 128>}, {pipeline_mode = #tpu.pipeline_mode<synchronous>, transform_indices = @transform_1, window_bounds = array<i64: 128, 64>}, {pipeline_mode = #tpu.pipeline_mode<synchronous>, transform_indices = @transform_2, window_bounds = array<i64: 1, 64>}, {pipeline_mode = #tpu.pipeline_mode<synchronous>, transform_indices = @transform_3, window_bounds = array<i64: 64, 32>}, {pipeline_mode = #tpu.pipeline_mode<synchronous>, transform_indices = @transform_4, window_bounds = array<i64: 1, 32>}, {pipeline_mode = #tpu.pipeline_mode<synchronous>, transform_indices = @transform_5, window_bounds = array<i64: 32, 64>}, {pipeline_mode = #tpu.pipeline_mode<synchronous>, transform_indices = @transform_6, window_bounds = array<i64: 1, 64>}, {pipeline_mode = #tpu.pipeline_mode<synchronous>, transform_indices = @transform_7, window_bounds = array<i64: 64, 128>}, {pipeline_mode = #tpu.pipeline_mode<synchronous>, transform_indices = @transform_8, window_bounds = array<i64: 1, 128>}, {transform_indices = @transform_9, window_bounds = array<i64: 8, 128>}]} {
    %c0 = arith.constant 0 : index
    %c0_0 = arith.constant 0 : index
    %0 = vector.load %arg1[%c0, %c0_0] : memref<8x128xf32, #tpu.memory_space<vmem>>, vector<8x128xf32>
    %c0_1 = arith.constant 0 : index
    %c0_2 = arith.constant 0 : index
    %1 = vector.load %arg2[%c0_1, %c0_2] : memref<128x64xf32, #tpu.memory_space<vmem>>, vector<128x64xf32>
    %cst = arith.constant dense<0.000000e+00> : vector<8x64xf32>
    %2 = tpu.matmul %0, %1, %cst {dimension_numbers = #tpu.dot_dimension_numbers<[1], [0], [0], [1], [0, 0, 1, 1], [], []>} : vector<8x128xf32>, vector<128x64xf32>, vector<8x64xf32> -> vector<8x64xf32>
    %c0_3 = arith.constant 0 : index
    %c0_4 = arith.constant 0 : index
    %3 = vector.load %arg3[%c0_3, %c0_4] : memref<1x64xf32, #tpu.memory_space<vmem>>, vector<1x64xf32>
    %4 = vector.broadcast %3 : vector<1x64xf32> to vector<8x64xf32>
    %5 = arith.addf %2, %4 : vector<8x64xf32>
    %cst_5 = arith.constant 0.000000e+00 : f32
    %6 = vector.broadcast %cst_5 : f32 to vector<8x64xf32>
    %7 = arith.maximumf %5, %6 : vector<8x64xf32>
    %c0_6 = arith.constant 0 : index
    %c0_7 = arith.constant 0 : index
    %8 = vector.load %arg4[%c0_6, %c0_7] : memref<64x32xf32, #tpu.memory_space<vmem>>, vector<64x32xf32>
    %cst_8 = arith.constant dense<0.000000e+00> : vector<8x32xf32>
    %9 = tpu.matmul %7, %8, %cst_8 {dimension_numbers = #tpu.dot_dimension_numbers<[1], [0], [0], [1], [0, 0, 1, 1], [], []>} : vector<8x64xf32>, vector<64x32xf32>, vector<8x32xf32> -> vector<8x32xf32>
    %c0_9 = arith.constant 0 : index
    %c0_10 = arith.constant 0 : index
    %10 = vector.load %arg5[%c0_9, %c0_10] : memref<1x32xf32, #tpu.memory_space<vmem>>, vector<1x32xf32>
    %11 = vector.broadcast %10 : vector<1x32xf32> to vector<8x32xf32>
    %12 = arith.addf %9, %11 : vector<8x32xf32>
    %cst_11 = arith.constant 0.000000e+00 : f32
    %13 = vector.broadcast %cst_11 : f32 to vector<8x32xf32>
    %14 = arith.maximumf %12, %13 : vector<8x32xf32>
    %c0_12 = arith.constant 0 : index
    %c0_13 = arith.constant 0 : index
    %15 = vector.load %arg6[%c0_12, %c0_13] : memref<32x64xf32, #tpu.memory_space<vmem>>, vector<32x64xf32>
    %cst_14 = arith.constant dense<0.000000e+00> : vector<8x64xf32>
    %16 = tpu.matmul %14, %15, %cst_14 {dimension_numbers = #tpu.dot_dimension_numbers<[1], [0], [0], [1], [0, 0, 1, 1], [], []>} : vector<8x32xf32>, vector<32x64xf32>, vector<8x64xf32> -> vector<8x64xf32>
    %c0_15 = arith.constant 0 : index
    %c0_16 = arith.constant 0 : index
    %17 = vector.load %arg7[%c0_15, %c0_16] : memref<1x64xf32, #tpu.memory_space<vmem>>, vector<1x64xf32>
    %18 = vector.broadcast %17 : vector<1x64xf32> to vector<8x64xf32>
    %19 = arith.addf %16, %18 : vector<8x64xf32>
    %cst_17 = arith.constant 0.000000e+00 : f32
    %20 = vector.broadcast %cst_17 : f32 to vector<8x64xf32>
    %21 = arith.maximumf %19, %20 : vector<8x64xf32>
    %c0_18 = arith.constant 0 : index
    %c0_19 = arith.constant 0 : index
    %22 = vector.load %arg8[%c0_18, %c0_19] : memref<64x128xf32, #tpu.memory_space<vmem>>, vector<64x128xf32>
    %cst_20 = arith.constant dense<0.000000e+00> : vector<8x128xf32>
    %23 = tpu.matmul %21, %22, %cst_20 {dimension_numbers = #tpu.dot_dimension_numbers<[1], [0], [0], [1], [0, 0, 1, 1], [], []>} : vector<8x64xf32>, vector<64x128xf32>, vector<8x128xf32> -> vector<8x128xf32>
    %c0_21 = arith.constant 0 : index
    %c0_22 = arith.constant 0 : index
    %24 = vector.load %arg9[%c0_21, %c0_22] : memref<1x128xf32, #tpu.memory_space<vmem>>, vector<1x128xf32>
    %25 = vector.broadcast %24 : vector<1x128xf32> to vector<8x128xf32>
    %26 = arith.addf %23, %25 : vector<8x128xf32>
    %cst_23 = arith.constant 0.000000e+00 : f32
    %27 = vector.broadcast %cst_23 : f32 to vector<8x128xf32>
    %28 = arith.maximumf %26, %27 : vector<8x128xf32>
    %c0_24 = arith.constant 0 : index
    %c0_25 = arith.constant 0 : index
    %29 = vector.load %arg10[%c0_24, %c0_25] : memref<8x128xf32, #tpu.memory_space<vmem>>, vector<8x128xf32>
    tpu.vector_store %arg10[%c0_24, %c0_25], %28 {strides = array<i32>} : memref<8x128xf32, #tpu.memory_space<vmem>>, vector<8x128xf32>,
    return
  }
  func.func @transform_0(%arg0: i32) -> (i32, i32) {
    %c0_i32 = arith.constant 0 : i32
    %c0_i32_0 = arith.constant 0 : i32
    return %arg0, %c0_i32 : i32, i32
  }
  func.func @transform_1(%arg0: i32) -> (i32, i32) {
    %c0_i32 = arith.constant 0 : i32
    %c0_i32_0 = arith.constant 0 : i32
    %c0_i32_1 = arith.constant 0 : i32
    return %c0_i32, %c0_i32_0 : i32, i32
  }
  func.func @transform_2(%arg0: i32) -> (i32, i32) {
    %c0_i32 = arith.constant 0 : i32
    %c0_i32_0 = arith.constant 0 : i32
    %c0_i32_1 = arith.constant 0 : i32
    return %c0_i32, %c0_i32_0 : i32, i32
  }
  func.func @transform_3(%arg0: i32) -> (i32, i32) {
    %c0_i32 = arith.constant 0 : i32
    %c0_i32_0 = arith.constant 0 : i32
    %c0_i32_1 = arith.constant 0 : i32
    return %c0_i32, %c0_i32_0 : i32, i32
  }
  func.func @transform_4(%arg0: i32) -> (i32, i32) {
    %c0_i32 = arith.constant 0 : i32
    %c0_i32_0 = arith.constant 0 : i32
    %c0_i32_1 = arith.constant 0 : i32
    return %c0_i32, %c0_i32_0 : i32, i32
  }
  func.func @transform_5(%arg0: i32) -> (i32, i32) {
    %c0_i32 = arith.constant 0 : i32
    %c0_i32_0 = arith.constant 0 : i32
    %c0_i32_1 = arith.constant 0 : i32
    return %c0_i32, %c0_i32_0 : i32, i32
  }
  func.func @transform_6(%arg0: i32) -> (i32, i32) {
    %c0_i32 = arith.constant 0 : i32
    %c0_i32_0 = arith.constant 0 : i32
    %c0_i32_1 = arith.constant 0 : i32
    return %c0_i32, %c0_i32_0 : i32, i32
  }
  func.func @transform_7(%arg0: i32) -> (i32, i32) {
    %c0_i32 = arith.constant 0 : i32
    %c0_i32_0 = arith.constant 0 : i32
    %c0_i32_1 = arith.constant 0 : i32
    return %c0_i32, %c0_i32_0 : i32, i32
  }
  func.func @transform_8(%arg0: i32) -> (i32, i32) {
    %c0_i32 = arith.constant 0 : i32
    %c0_i32_0 = arith.constant 0 : i32
    %c0_i32_1 = arith.constant 0 : i32
    return %c0_i32, %c0_i32_0 : i32, i32
  }
  func.func @transform_9(%arg0: i32) -> (i32, i32) {
    %c0_i32 = arith.constant 0 : i32
    %c0_i32_0 = arith.constant 0 : i32
    return %arg0, %c0_i32 : i32, i32
  }
}

</mosaic_0001>

<bundles_post_ra>
// kernel: tpu_custom_call.1
= control target key start
LH: loop header
LB: loop body
LE: loop exit
PB: predicated region body
PF: predicated region fallthrough
CT: control target
= control target key end

     0   :  { %v564_v1 = vmov 0.0   ;;  %vm565_vm0 = vmmov 0   ;;  %s789_s0 = inlined_call_operand.vmem [shape: f32[8,128], index: 0, kind: input, shape index: {}]   ;;  %s790_s1 = inlined_call_operand.vmem [shape: f32[128,64], index: 1, kind: input, shape index: {}]   ;;  %s791_s2 = inlined_call_operand.vmem [shape: f32[1,64], index: 2, kind: input, shape index: {}]   ;;  %s792_s3 = inlined_call_operand.vmem [shape: f32[64,32], index: 3, kind: input, shape index: {}]   ;;  %s793_s4 = inlined_call_operand.vmem [shape: f32[1,32], index: 4, kind: input, shape index: {}]   ;;  %s794_s5 = inlined_call_operand.vmem [shape: f32[32,64], index: 5, kind: input, shape index: {}]   ;;  %s795_s6 = inlined_call_operand.vmem [shape: f32[1,64], index: 6, kind: input, shape index: {}]   ;;  %s796_s7 = inlined_call_operand.vmem [shape: f32[64,128], index: 7, kind: input, shape index: {}]   ;;  %s797_s8 = inlined_call_operand.vmem [shape: f32[1,128], index: 8, kind: input, shape index: {}]   ;;  %s798_s9 = inlined_call_operand.hbm [shape: f32[8,128], index: 9, kind: output, shape index: {}]  }
   0x1   :  { %v49_v0 = vld [vmem:[%s790_s1 + $0x78] sm:$0xff]  ;;  %455 = vmatprep.subr.mxu0 %v564_v1  ;;  %v48_v2 = vld [vmem:[%s790_s1 + $0x70] sm:$0xff]  ;;  %487 = vmatprep.mubr.msk.f32.mxu0 %vm565_vm0, %v564_v1  ;;  %v47_v3 = vld [vmem:[%s790_s1 + $0x68] sm:$0xff] }
   0x2   :  { %456 = vmatpush3.msra.mxu0 %v49_v0  ;;  %490 = vmatprep.subr.mxu1 %v564_v1  ;;  %v46_v4 = vld [vmem:[%s790_s1 + $0x60] sm:$0xff]  ;;  %v135_v5 = vld [vmem:[%s792_s3 + $0x38] sm:$0xff]  ;;  %v134_v6 = vld [vmem:[%s792_s3 + $0x30] sm:$0xff] }
   0x3   :  { %457 = vmatprep.subr.mxu0 %v564_v1  ;;  %506 = vmatprep.mubr.msk.f32.mxu1 %vm565_vm0, %v564_v1  ;;  %v45_v7 = vld [vmem:[%s790_s1 + $0x58] sm:$0xff]  ;;  %v133_v8 = vld [vmem:[%s792_s3 + $0x28] sm:$0xff] }
   0x4   :  { %458 = vmatpush3.msra.mxu0 %v48_v2  ;;  %491 = vmatpush3.msra.mxu1 %v135_v5 }
   0x5   :  { %459 = vmatprep.subr.mxu0 %v564_v1  ;;  %492 = vmatprep.subr.mxu1 %v564_v1 }
   0x6   :  { %460 = vmatpush3.msra.mxu0 %v47_v3 }
   0x7   :  { %461 = vmatprep.subr.mxu0 %v564_v1 }
   0x8   :  { %14 = vsyncpa [#allocation3], 0  ;;  %462 = vmatpush3.msra.mxu0 %v46_v4  ;;  %493 = vmatpush3.msra.mxu1 %v134_v6  ;;  %v44_v9 = vld [vmem:[%s790_s1 + $0x50] sm:$0xff]  ;;  %v132_v10 = vld [vmem:[%s792_s3 + $0x20] sm:$0xff]  ;;  %vm143_vm1 = vcmask 523264   ;;  %vm229_vm2 = vcmask 261120  }
   0x9   :  { %463 = vmatprep.subr.mxu0 %v564_v1  ;;  %494 = vmatprep.subr.mxu1 %v564_v1  ;;  %v43_v11 = vld [vmem:[%s790_s1 + $0x48] sm:$0xff]  ;;  %v131_v12 = vld [vmem:[%s792_s3 + $0x18] sm:$0xff]  ;;  %v42_v13 = vld [vmem:[%s790_s1 + $0x40] sm:$0xff]  ;;  %s566_s19 = smov [#allocation2]  }
   0xa   :  { %464 = vmatpush3.msra.mxu0 %v45_v7  ;;  %495 = vmatpush3.msra.mxu1 %v133_v8  ;;  %v41_v14 = vld [vmem:[%s790_s1 + $0x38] sm:$0xff]  ;;  %v40_v15 = vld [vmem:[%s790_s1 + $0x30] sm:$0xff]  ;;  %v39_v16 = vld [vmem:[%s790_s1 + $0x28] sm:$0xff] }
   0xb   :  { %465 = vmatprep.subr.mxu0 %v564_v1  ;;  %496 = vmatprep.subr.mxu1 %v564_v1  ;;  %v38_v17 = vld [vmem:[%s790_s1 + $0x20] sm:$0xff]  ;;  %v37_v18 = vld [vmem:[%s790_s1 + $0x18] sm:$0xff]  ;;  %v36_v19 = vld [vmem:[%s790_s1 + $0x10] sm:$0xff] }
   0xc   :  { %466 = vmatpush3.msra.mxu0 %v44_v9  ;;  %497 = vmatpush3.msra.mxu1 %v132_v10  ;;  %v35_v20 = vld [vmem:[%s790_s1 + $0x8] sm:$0xff]  ;;  %v34_v21 = vld [vmem:[%s790_s1] sm:$0xff]  ;;  %v130_v23 = vld [vmem:[%s792_s3 + $0x10] sm:$0xff] }
   0xd   :  { %467 = vmatprep.subr.mxu0 %v564_v1  ;;  %498 = vmatprep.subr.mxu1 %v564_v1  ;;  %v33_v22 = vld [vmem:[%s789_s0] sm:$0xff]  ;;  %v129_v24 = vld [vmem:[%s792_s3 + $0x8] sm:$0xff]  ;;  %v221_v31 = vld [vmem:[%s794_s5 + $0x18] sm:$0xff] }
   0xe   :  { %468 = vmatpush3.msra.mxu0 %v43_v11  ;;  %499 = vmatpush3.msra.mxu1 %v131_v12  ;;  %v128_v25 = vld [vmem:[%s792_s3] sm:$0xff]  ;;  %v220_v32 = vld [vmem:[%s794_s5 + $0x10] sm:$0xff]  ;;  %v219_v33 = vld [vmem:[%s794_s5 + $0x8] sm:$0xff] }
   0xf   :  { %469 = vmatprep.subr.mxu0 %v564_v1  ;;  %500 = vmatprep.subr.mxu1 %v564_v1  ;;  %v408_v26 = vld [vmem:[%s791_s2] ss:$0 sm:$0xff]  ;;  %v311_v40 = vld [vmem:[%s796_s7 + $0x38] sm:$0xff]  ;;  %v310_v41 = vld [vmem:[%s796_s7 + $0x30] sm:$0xff]  ;;  %s400_s2 = sshll.u32 %s566_s19, 4  ;;  %s401_s2 = int_to_ptr.vmem [resolvable:$true] %s400_s2 }
  0x10   :  { %470 = vmatpush3.msra.mxu0 %v42_v13  ;;  %501 = vmatpush3.msra.mxu1 %v130_v23  ;;  %v218_v34 = vld [vmem:[%s794_s5] sm:$0xff]  ;;  %v309_v42 = vld [vmem:[%s796_s7 + $0x28] sm:$0xff]  ;;  %v307_v44 = vld [vmem:[%s796_s7 + $0x18] sm:$0xff]  ;;  %p547_p1 = scmp.lt.s32.totalorder %s401_s2, %s401_s2 }
  0x11   :  { %471 = vmatprep.subr.mxu0 %v564_v1  ;;  %502 = vmatprep.subr.mxu1 %v564_v1  ;;  %v409_v35 = vld [vmem:[%s793_s4] ss:$0 sm:$0xff]  ;;  %v306_v45 = vld [vmem:[%s796_s7 + $0x10] sm:$0xff]  ;;  %v305_v46 = vld [vmem:[%s796_s7 + $0x8] sm:$0xff] }
  0x12   :  { %472 = vmatpush3.msra.mxu0 %v41_v14  ;;  %503 = vmatpush3.msra.mxu1 %v129_v24  ;;  %v308_v43 = vld [vmem:[%s796_s7 + $0x20] sm:$0xff] }
  0x13   :  { %473 = vmatprep.subr.mxu0 %v564_v1  ;;  %504 = vmatprep.subr.mxu1 %v564_v1  ;;  %v304_v47 = vld [vmem:[%s796_s7] sm:$0xff]  ;;  %s542_s7 = scalar_lea.vmem %s401_s2, 128 }
  0x14   :  { %474 = vmatpush3.msra.mxu0 %v40_v15  ;;  %505 = vmatpush3.msra.mxu1 %v128_v25  ;;  %v411_v48 = vld [vmem:[%s795_s6] ss:$0 sm:$0xff]  ;;  %p543_p0 = scmp.ne.s32.totalorder %s401_s2, %s542_s7  ;;  %p548_p2 = scmp.lt.s32.totalorder %s542_s7, %s542_s7 }
  0x15   :  { %475 = vmatprep.subr.mxu0 %v564_v1  ;;  %509 = vmatprep.subr.mxu1 %v564_v1  ;;  %v413_v53 = vld [vmem:[%s797_s8] ss:$0 sm:$0xff] }
  0x16   :  { %476 = vmatpush3.msra.mxu0 %v39_v16  ;;  %p549_p3 = por %p548_p2, %p547_p1 }
  0x17   :  { %477 = vmatprep.subr.mxu0 %v564_v1 }
  0x18   :  { %478 = vmatpush3.msra.mxu0 %v38_v17  ;;  %p550_p4 = pnand %p549_p3, %p543_p0 }
  0x19   :  { %479 = vmatprep.subr.mxu0 %v564_v1 }
  0x1a   :  { %480 = vmatpush3.msra.mxu0 %v37_v18 }
  0x1b   :  { %481 = vmatprep.subr.mxu0 %v564_v1 }
  0x1c   :  { %482 = vmatpush3.msra.mxu0 %v36_v19 }
  0x1d   :  { %483 = vmatprep.subr.mxu0 %v564_v1 }
  0x1e   :  { %484 = vmatpush3.msra.mxu0 %v35_v20 }
  0x1f   :  { %485 = vmatprep.subr.mxu0 %v564_v1 }
  0x20   :  { %486 = vmatpush3.msra.mxu0 %v34_v21 }
  0x21   :  { %488 = vmatmul.mubr.f32.vlgmr.msra.gmra.mxu0 %v33_v22 }
  0xe1   :  { %v123_v27 = vpop.f32.mrf.mxu0 }
  0xe2   :  { %v124_v28 = vadd.f32 %v408_v26, %v123_v27 }
  0xe3   :  { %v489_v29 = vpop.f32.mrf.mxu0 }
  0xe4   :  { %v127_v30 = vmax.f32 %v124_v28, 0.0 }
  0xe6   :  { %507 = vmatmul.mubr.msk.f32.vlgmr.msra.gmra.mxu1 %vm143_vm1, %v127_v30 }
  0xe7   :  { %510 = vmatpush3.msra.mxu1 %v221_v31  ;;  %517 = vmatprep.mubr.msk.f32.mxu1 %vm565_vm0, %v564_v1 }
  0xe8   :  { %511 = vmatprep.subr.mxu1 %v564_v1 }
  0xe9   :  { %512 = vmatpush3.msra.mxu1 %v220_v32 }
  0xea   :  { %513 = vmatprep.subr.mxu1 %v564_v1 }
  0xeb   :  { %514 = vmatpush3.msra.mxu1 %v219_v33 }
  0xec   :  { %515 = vmatprep.subr.mxu1 %v564_v1 }
  0xed   :  { %516 = vmatpush3.msra.mxu1 %v218_v34 }
  0xee   :  { %520 = vmatprep.subr.mxu1 %v564_v1 }
 0x1a6   :  { %v213_v36 = vpop.f32.mrf.mxu1 }
 0x1a7   :  { %v214_v37 = vadd.f32 %v409_v35, %v213_v36 }
 0x1a8   :  { %v508_v38 = vpop.f32.mrf.mxu1 }
 0x1a9   :  { %v217_v39 = vmax.f32 %v214_v37, 0.0 }
 0x1ab   :  { %518 = vmatmul.mubr.msk.f32.vlgmr.msra.gmra.mxu1 %vm229_vm2, %v217_v39 }
 0x1ac   :  { %521 = vmatpush3.msra.mxu1 %v311_v40  ;;  %536 = vmatprep.mubr.msk.f32.mxu1 %vm565_vm0, %v564_v1 }
 0x1ad   :  { %522 = vmatprep.subr.mxu1 %v564_v1 }
 0x1ae   :  { %523 = vmatpush3.msra.mxu1 %v310_v41 }
 0x1af   :  { %524 = vmatprep.subr.mxu1 %v564_v1 }
 0x1b0   :  { %525 = vmatpush3.msra.mxu1 %v309_v42 }
 0x1b1   :  { %526 = vmatprep.subr.mxu1 %v564_v1 }
 0x1b2   :  { %527 = vmatpush3.msra.mxu1 %v308_v43 }
 0x1b3   :  { %528 = vmatprep.subr.mxu1 %v564_v1 }
 0x1b4   :  { %529 = vmatpush3.msra.mxu1 %v307_v44 }
 0x1b5   :  { %530 = vmatprep.subr.mxu1 %v564_v1 }
 0x1b6   :  { %531 = vmatpush3.msra.mxu1 %v306_v45 }
 0x1b7   :  { %532 = vmatprep.subr.mxu1 %v564_v1 }
 0x1b8   :  { %533 = vmatpush3.msra.mxu1 %v305_v46 }
 0x1b9   :  { %534 = vmatprep.subr.mxu1 %v564_v1 }
 0x1ba   :  { %535 = vmatpush3.msra.mxu1 %v304_v47 }
 0x26b   :  { %v299_v49 = vpop.f32.mrf.mxu1 }
 0x26c   :  { %v300_v50 = vadd.f32 %v411_v48, %v299_v49 }
 0x26d   :  { %v519_v51 = vpop.f32.mrf.mxu1 }
 0x26e   :  { %v303_v52 = vmax.f32 %v300_v50, 0.0 }
 0x270   :  { %537 = vmatmul.mubr.msk.f32.vlgmr.msra.gmra.mxu1 %vm143_vm1, %v303_v52 }
 0x330   :  { %v388_v54 = vpop.f32.mrf.mxu1 }
 0x331   :  { %v389_v55 = vadd.f32 %v413_v53, %v388_v54 }
 0x332   :  { %v538_v56 = vpop.f32.mrf.mxu1 }
 0x333   :  { %v392_v57 = vmax.f32 %v389_v55, 0.0 }
 0x335   :  { %393 = vst [vmem:[#allocation2] sm:$0xff] %v392_v57 }
 0x336   :  { %553 = shalt.err (!%p550_p4)
}
 0x337   :  { %403 = dma.vmem_to_hbm [thread:$0]  %s401_s2, 128, %s798_s9, [#allocation3]  }
 0x338   :  { %562 = dma.done.wait [#allocation3], 128  }
 0x339   :  { %563 = vsyncadd [#allocation3], 4294967168 }
 0x33a   :  { %407 = vsyncpa [#allocation3], 1 }

</bundles_post_ra>
